<compile_context>
chip_gen: v7x
topology: tpu7x:2x2x1
jax: 0.10.0
libtpu: 0.0.40
codegen_flags: <defaults>
</compile_context>

<pallas_src>
import functools

import jax
import jax.numpy as jnp
from jax.experimental import pallas as pl
from jax.experimental.pallas import tpu as pltpu

_SCALE_CENTERED = 100.0   # scale_centered_coord
_N_EXTRA = 13             # 2 coord + 2 centered + 2 norm + 1 r + 4 bord + 2 fov


def _full_recip(x):
    """1/x via EUP approx reciprocal + one Newton step (no vector divide)."""
    r = pl.reciprocal(x, approx=True)
    return r * (2.0 - x * r)


def _atan(x):
    """f32 atan (Cephes-style) built from add/mul/select + approx reciprocal
    so it is guaranteed to lower in Mosaic."""
    t3p8 = 2.414213562373095      # tan(3*pi/8)
    tp8 = 0.4142135623730951      # tan(pi/8)
    sgn = jnp.where(x < 0.0, jnp.float32(-1.0), jnp.float32(1.0))
    a = jnp.abs(x)
    big = a > t3p8
    mid = a > tp8                  # note: big implies mid
    # big:  xr = -1 / a      (a > 2.414, never near zero)
    # mid:  xr = (a-1)/(a+1)
    # else: xr = a
    denom = jnp.where(big, a, a + 1.0)
    numer = jnp.where(big, jnp.float32(-1.0), a - 1.0)
    frac = numer * _full_recip(denom)
    xr = jnp.where(mid, frac, a)
    y0 = jnp.where(big, jnp.float32(jnp.pi / 2),
                   jnp.where(mid, jnp.float32(jnp.pi / 4), jnp.float32(0.0)))
    z = xr * xr
    poly = (((8.05374449538e-2 * z - 1.38776856032e-1) * z
             + 1.99777106478e-1) * z - 3.33329491539e-1)
    return sgn * (y0 + xr + xr * z * poly)


def _extra_channels_kernel(params_ref, o_ref, *, H, W, TH, inv_scale):
    # params_ref: SMEM (N, 4) = [cx, cy, 1/fx, 1/fy]
    # o_ref:      VMEM (13, TH, W) tile of the (N, 13, H, W) output
    b = pl.program_id(0)
    t = pl.program_id(1)

    col = jax.lax.broadcasted_iota(jnp.int32, (TH, W), 1)
    row = jax.lax.broadcasted_iota(jnp.int32, (TH, W), 0) + t * TH
    xx = col.astype(jnp.float32)
    yy = row.astype(jnp.float32)

    cx = params_ref[b, 0]
    cy = params_ref[b, 1]
    inv_fx = params_ref[b, 2]
    inv_fy = params_ref[b, 3]

    # compile-time constants (guard W==1 / H==1 against div-by-zero)
    sx = 2.0 / max(W - 1, 1)
    sy = 2.0 / max(H - 1, 1)
    wm1 = float(W - 1)
    hm1 = float(H - 1)

    norm_xx = xx * sx - 1.0
    norm_yy = yy * sy - 1.0
    norm_rr = jnp.sqrt(jnp.square(norm_xx - 0.5) + jnp.square(norm_yy - 0.5))

    cent_xx = xx - cx + 0.5
    cent_yy = yy - cy + 0.5
    fov_xx = _atan(cent_xx * inv_fx)
    fov_yy = _atan(cent_yy * inv_fy)
    sc_xx = cent_xx * inv_scale
    sc_yy = cent_yy * inv_scale

    r_dist = wm1 - xx       # l_dist == xx, t_dist == yy (reused below)
    b_dist = hm1 - yy

    channels = (norm_xx, norm_yy, norm_rr, fov_xx, fov_yy, sc_xx, sc_yy,
                xx, yy, xx, r_dist, yy, b_dist)
    for k, ch in enumerate(channels):       # direct per-channel stores;
        o_ref[k] = ch                       # no concat temporary in VMEM


def _pick_th(H, W):
    """Rows per output tile: multiple of 8 (or H itself); keeps the
    double-buffered (13, TH, W) f32 block around <= 2 MiB (safe on the
    default scoped VMEM of v5e/v6e/v7x)."""
    bytes_per_row = _N_EXTRA * W * 4
    cap = max(8, (1 << 21) // max(bytes_per_row, 1))
    th = min(H, 128, cap)
    th -= th % 8
    if th <= 0 or th >= H:
        return H
    return th


def add_cam_coords(x, cx, cy, fx, fy, scale_centered_coord=_SCALE_CENTERED):
    """x: (N, C, H, W); cx/cy/fx/fy: (N,) per-camera intrinsics."""
    N, C, H, W = x.shape
    TH = _pick_th(H, W)
    n_h = pl.cdiv(H, TH)

    # Scalars packed for SMEM; reciprocals precomputed so the kernel only
    # multiplies.
    params = jnp.stack(
        [cx.astype(jnp.float32), cy.astype(jnp.float32),
         1.0 / fx.astype(jnp.float32), 1.0 / fy.astype(jnp.float32)], axis=1)

    kernel = functools.partial(
        _extra_channels_kernel, H=H, W=W, TH=TH,
        inv_scale=1.0 / float(scale_centered_coord))

    extra = pl.pallas_call(
        kernel,
        out_shape=jax.ShapeDtypeStruct((N, _N_EXTRA, H, W), jnp.float32),
        grid=(N, n_h),
        in_specs=[pl.BlockSpec(memory_space=pltpu.SMEM)],
        out_specs=pl.BlockSpec((None, _N_EXTRA, TH, W),
                               lambda b, t: (b, 0, t, 0)),
        compiler_params=pltpu.CompilerParams(
            dimension_semantics=("parallel", "parallel")),
    )(params)

    # Passthrough of x stays out of the compute path: a single XLA concatenate
    # does the bulk channel copy (no kernel VMEM tied to C, no vst slots spent
    # on a vreg copy of x).
    return jnp.concatenate([extra.astype(x.dtype), x], axis=1)


def _ref_forward(x, cx, cy, fx, fy, scale=_SCALE_CENTERED):
    """Pure-JAX reference mirroring the PyTorch forward (all flags on)."""
    N, C, H, W = x.shape
    xx = jnp.broadcast_to(
        jnp.arange(W, dtype=jnp.float32)[None, None, None, :], (N, 1, H, W))
    yy = jnp.broadcast_to(
        jnp.arange(H, dtype=jnp.float32)[None, None, :, None], (N, 1, H, W))
    cx4 = cx[:, None, None, None]
    cy4 = cy[:, None, None, None]
    fx4 = fx[:, None, None, None]
    fy4 = fy[:, None, None, None]
    norm_xx = xx / (W - 1) * 2.0 - 1.0
    norm_yy = yy / (H - 1) * 2.0 - 1.0
    norm_rr = jnp.sqrt(jnp.square(norm_xx - 0.5) + jnp.square(norm_yy - 0.5))
    cent_xx = xx - cx4 + 0.5
    cent_yy = yy - cy4 + 0.5
    fov_xx = jnp.arctan(cent_xx / fx4)
    fov_yy = jnp.arctan(cent_yy / fy4)
    extra = jnp.concatenate(
        [norm_xx, norm_yy, norm_rr, fov_xx, fov_yy,
         cent_xx / scale, cent_yy / scale,
         xx, yy,
         xx, float(W) - xx - 1.0, yy, float(H) - yy - 1.0], axis=1)
    return jnp.concatenate([extra, x], axis=1)


if __name__ == "__main__":
    N, C, H, W = 2, 4, 16, 16
    key = jax.random.PRNGKey(0)
    x = jax.random.normal(key, (N, C, H, W), dtype=jnp.float32)
    # deterministic camera intrinsics (per batch element)
    cx = jnp.array([7.3, 8.1], dtype=jnp.float32)
    cy = jnp.array([8.2, 7.6], dtype=jnp.float32)
    fx = jnp.array([20.0, 24.0], dtype=jnp.float32)
    fy = jnp.array([21.0, 23.0], dtype=jnp.float32)

    out = jax.block_until_ready(add_cam_coords(x, cx, cy, fx, fy))
    ref = _ref_forward(x, cx, cy, fx, fy)

    assert out.shape == (N, C + _N_EXTRA, H, W), out.shape
    max_err = float(jnp.max(jnp.abs(out - ref)))
    assert max_err < 1e-4, f"max abs error {max_err}"
    print("KERNEL_OK")
</pallas_src>

<mosaic_0001>
module attributes {stable_mosaic.version = 11 : i64} {
  func.func @_extra_channels_kernel(%arg0: i32, %arg1: i32, %arg2: memref<2x4xf32, #tpu.memory_space<smem>>, %arg3: memref<1x13x16x16xf32, #tpu.memory_space<vmem>>) attributes {dimension_semantics = [#tpu.dimension_semantics<parallel>, #tpu.dimension_semantics<parallel>], iteration_bounds = array<i64: 2, 1>, scalar_prefetch = 0 : i64, scratch_operands = 0 : i64, tpu.core_type = #tpu.core_type<tc>, window_params = [{transform_indices = @transform_0, window_bounds = array<i64: 2, 4>}, {transform_indices = @transform_1, window_bounds = array<i64: 1, 13, 16, 16>}]} {
    %0 = tpu.iota {dimensions = array<i32: 1>} : vector<16x16xi32>
    %1 = tpu.iota {dimensions = array<i32: 0>} : vector<16x16xi32>
    %c16_i32 = arith.constant 16 : i32
    %2 = arith.muli %arg1, %c16_i32 : i32
    %3 = vector.broadcast %2 : i32 to vector<16x16xi32>
    %4 = arith.addi %1, %3 : vector<16x16xi32>
    %5 = arith.sitofp %0 : vector<16x16xi32> to vector<16x16xf32>
    %6 = arith.sitofp %4 : vector<16x16xi32> to vector<16x16xf32>
    %7 = arith.index_cast %arg0 : i32 to index
    %c0 = arith.constant 0 : index
    %8 = memref.load %arg2[%7, %c0] : memref<2x4xf32, #tpu.memory_space<smem>>
    %9 = arith.index_cast %arg0 : i32 to index
    %c1 = arith.constant 1 : index
    %10 = memref.load %arg2[%9, %c1] : memref<2x4xf32, #tpu.memory_space<smem>>
    %11 = arith.index_cast %arg0 : i32 to index
    %c2 = arith.constant 2 : index
    %12 = memref.load %arg2[%11, %c2] : memref<2x4xf32, #tpu.memory_space<smem>>
    %13 = arith.index_cast %arg0 : i32 to index
    %c3 = arith.constant 3 : index
    %14 = memref.load %arg2[%13, %c3] : memref<2x4xf32, #tpu.memory_space<smem>>
    %cst = arith.constant 0.13333334 : f32
    %15 = vector.broadcast %cst : f32 to vector<16x16xf32>
    %16 = arith.mulf %5, %15 : vector<16x16xf32>
    %cst_0 = arith.constant 1.000000e+00 : f32
    %17 = vector.broadcast %cst_0 : f32 to vector<16x16xf32>
    %18 = arith.subf %16, %17 : vector<16x16xf32>
    %cst_1 = arith.constant 0.13333334 : f32
    %19 = vector.broadcast %cst_1 : f32 to vector<16x16xf32>
    %20 = arith.mulf %6, %19 : vector<16x16xf32>
    %cst_2 = arith.constant 1.000000e+00 : f32
    %21 = vector.broadcast %cst_2 : f32 to vector<16x16xf32>
    %22 = arith.subf %20, %21 : vector<16x16xf32>
    %cst_3 = arith.constant 5.000000e-01 : f32
    %23 = vector.broadcast %cst_3 : f32 to vector<16x16xf32>
    %24 = arith.subf %18, %23 : vector<16x16xf32>
    %25 = arith.mulf %24, %24 : vector<16x16xf32>
    %cst_4 = arith.constant 5.000000e-01 : f32
    %26 = vector.broadcast %cst_4 : f32 to vector<16x16xf32>
    %27 = arith.subf %22, %26 : vector<16x16xf32>
    %28 = arith.mulf %27, %27 : vector<16x16xf32>
    %29 = arith.addf %25, %28 : vector<16x16xf32>
    %30 = math.sqrt %29 : vector<16x16xf32>
    %31 = vector.broadcast %8 : f32 to vector<16x16xf32>
    %32 = arith.subf %5, %31 : vector<16x16xf32>
    %cst_5 = arith.constant 5.000000e-01 : f32
    %33 = vector.broadcast %cst_5 : f32 to vector<16x16xf32>
    %34 = arith.addf %32, %33 : vector<16x16xf32>
    %35 = vector.broadcast %10 : f32 to vector<16x16xf32>
    %36 = arith.subf %6, %35 : vector<16x16xf32>
    %cst_6 = arith.constant 5.000000e-01 : f32
    %37 = vector.broadcast %cst_6 : f32 to vector<16x16xf32>
    %38 = arith.addf %36, %37 : vector<16x16xf32>
    %39 = vector.broadcast %12 : f32 to vector<16x16xf32>
    %40 = arith.mulf %34, %39 : vector<16x16xf32>
    %cst_7 = arith.constant 0.000000e+00 : f32
    %41 = vector.broadcast %cst_7 : f32 to vector<16x16xf32>
    %42 = arith.cmpf olt, %40, %41 : vector<16x16xf32>
    %cst_8 = arith.constant -1.000000e+00 : f32
    %cst_9 = arith.constant 1.000000e+00 : f32
    %43 = vector.broadcast %cst_8 : f32 to vector<16x16xf32>
    %44 = vector.broadcast %cst_9 : f32 to vector<16x16xf32>
    %45 = arith.select %42, %43, %44 : vector<16x16xi1>, vector<16x16xf32>
    %46 = math.absf %40 : vector<16x16xf32>
    %cst_10 = arith.constant 2.41421366 : f32
    %47 = vector.broadcast %cst_10 : f32 to vector<16x16xf32>
    %48 = arith.cmpf ogt, %46, %47 : vector<16x16xf32>
    %cst_11 = arith.constant 0.414213568 : f32
    %49 = vector.broadcast %cst_11 : f32 to vector<16x16xf32>
    %50 = arith.cmpf ogt, %46, %49 : vector<16x16xf32>
    %cst_12 = arith.constant 1.000000e+00 : f32
    %51 = vector.broadcast %cst_12 : f32 to vector<16x16xf32>
    %52 = arith.addf %46, %51 : vector<16x16xf32>
    %53 = arith.select %48, %46, %52 : vector<16x16xi1>, vector<16x16xf32>
    %cst_13 = arith.constant 1.000000e+00 : f32
    %54 = vector.broadcast %cst_13 : f32 to vector<16x16xf32>
    %55 = arith.subf %46, %54 : vector<16x16xf32>
    %cst_14 = arith.constant -1.000000e+00 : f32
    %56 = vector.broadcast %cst_14 : f32 to vector<16x16xf32>
    %57 = arith.select %48, %56, %55 : vector<16x16xi1>, vector<16x16xf32>
    %58 = tpu.reciprocal %53 {approx = true} : vector<16x16xf32> -> vector<16x16xf32>
    %59 = arith.mulf %53, %58 : vector<16x16xf32>
    %cst_15 = arith.constant 2.000000e+00 : f32
    %60 = vector.broadcast %cst_15 : f32 to vector<16x16xf32>
    %61 = arith.subf %60, %59 : vector<16x16xf32>
    %62 = arith.mulf %58, %61 : vector<16x16xf32>
    %63 = arith.mulf %57, %62 : vector<16x16xf32>
    %64 = arith.select %50, %63, %46 : vector<16x16xi1>, vector<16x16xf32>
    %cst_16 = arith.constant 0.785398185 : f32
    %cst_17 = arith.constant 0.000000e+00 : f32
    %65 = vector.broadcast %cst_16 : f32 to vector<16x16xf32>
    %66 = vector.broadcast %cst_17 : f32 to vector<16x16xf32>
    %67 = arith.select %50, %65, %66 : vector<16x16xi1>, vector<16x16xf32>
    %cst_18 = arith.constant 1.57079637 : f32
    %68 = vector.broadcast %cst_18 : f32 to vector<16x16xf32>
    %69 = arith.select %48, %68, %67 : vector<16x16xi1>, vector<16x16xf32>
    %70 = arith.mulf %64, %64 : vector<16x16xf32>
    %cst_19 = arith.constant 0.0805374458 : f32
    %71 = vector.broadcast %cst_19 : f32 to vector<16x16xf32>
    %72 = arith.mulf %71, %70 : vector<16x16xf32>
    %cst_20 = arith.constant 0.138776854 : f32
    %73 = vector.broadcast %cst_20 : f32 to vector<16x16xf32>
    %74 = arith.subf %72, %73 : vector<16x16xf32>
    %75 = arith.mulf %74, %70 : vector<16x16xf32>
    %cst_21 = arith.constant 0.199777111 : f32
    %76 = vector.broadcast %cst_21 : f32 to vector<16x16xf32>
    %77 = arith.addf %75, %76 : vector<16x16xf32>
    %78 = arith.mulf %77, %70 : vector<16x16xf32>
    %cst_22 = arith.constant 0.333329499 : f32
    %79 = vector.broadcast %cst_22 : f32 to vector<16x16xf32>
    %80 = arith.subf %78, %79 : vector<16x16xf32>
    %81 = arith.addf %69, %64 : vector<16x16xf32>
    %82 = arith.mulf %64, %70 : vector<16x16xf32>
    %83 = arith.mulf %82, %80 : vector<16x16xf32>
    %84 = arith.addf %81, %83 : vector<16x16xf32>
    %85 = arith.mulf %45, %84 : vector<16x16xf32>
    %86 = vector.broadcast %14 : f32 to vector<16x16xf32>
    %87 = arith.mulf %38, %86 : vector<16x16xf32>
    %cst_23 = arith.constant 0.000000e+00 : f32
    %88 = vector.broadcast %cst_23 : f32 to vector<16x16xf32>
    %89 = arith.cmpf olt, %87, %88 : vector<16x16xf32>
    %cst_24 = arith.constant -1.000000e+00 : f32
    %cst_25 = arith.constant 1.000000e+00 : f32
    %90 = vector.broadcast %cst_24 : f32 to vector<16x16xf32>
    %91 = vector.broadcast %cst_25 : f32 to vector<16x16xf32>
    %92 = arith.select %89, %90, %91 : vector<16x16xi1>, vector<16x16xf32>
    %93 = math.absf %87 : vector<16x16xf32>
    %cst_26 = arith.constant 2.41421366 : f32
    %94 = vector.broadcast %cst_26 : f32 to vector<16x16xf32>
    %95 = arith.cmpf ogt, %93, %94 : vector<16x16xf32>
    %cst_27 = arith.constant 0.414213568 : f32
    %96 = vector.broadcast %cst_27 : f32 to vector<16x16xf32>
    %97 = arith.cmpf ogt, %93, %96 : vector<16x16xf32>
    %cst_28 = arith.constant 1.000000e+00 : f32
    %98 = vector.broadcast %cst_28 : f32 to vector<16x16xf32>
    %99 = arith.addf %93, %98 : vector<16x16xf32>
    %100 = arith.select %95, %93, %99 : vector<16x16xi1>, vector<16x16xf32>
    %cst_29 = arith.constant 1.000000e+00 : f32
    %101 = vector.broadcast %cst_29 : f32 to vector<16x16xf32>
    %102 = arith.subf %93, %101 : vector<16x16xf32>
    %cst_30 = arith.constant -1.000000e+00 : f32
    %103 = vector.broadcast %cst_30 : f32 to vector<16x16xf32>
    %104 = arith.select %95, %103, %102 : vector<16x16xi1>, vector<16x16xf32>
    %105 = tpu.reciprocal %100 {approx = true} : vector<16x16xf32> -> vector<16x16xf32>
    %106 = arith.mulf %100, %105 : vector<16x16xf32>
    %cst_31 = arith.constant 2.000000e+00 : f32
    %107 = vector.broadcast %cst_31 : f32 to vector<16x16xf32>
    %108 = arith.subf %107, %106 : vector<16x16xf32>
    %109 = arith.mulf %105, %108 : vector<16x16xf32>
    %110 = arith.mulf %104, %109 : vector<16x16xf32>
    %111 = arith.select %97, %110, %93 : vector<16x16xi1>, vector<16x16xf32>
    %cst_32 = arith.constant 0.785398185 : f32
    %cst_33 = arith.constant 0.000000e+00 : f32
    %112 = vector.broadcast %cst_32 : f32 to vector<16x16xf32>
    %113 = vector.broadcast %cst_33 : f32 to vector<16x16xf32>
    %114 = arith.select %97, %112, %113 : vector<16x16xi1>, vector<16x16xf32>
    %cst_34 = arith.constant 1.57079637 : f32
    %115 = vector.broadcast %cst_34 : f32 to vector<16x16xf32>
    %116 = arith.select %95, %115, %114 : vector<16x16xi1>, vector<16x16xf32>
    %117 = arith.mulf %111, %111 : vector<16x16xf32>
    %cst_35 = arith.constant 0.0805374458 : f32
    %118 = vector.broadcast %cst_35 : f32 to vector<16x16xf32>
    %119 = arith.mulf %118, %117 : vector<16x16xf32>
    %cst_36 = arith.constant 0.138776854 : f32
    %120 = vector.broadcast %cst_36 : f32 to vector<16x16xf32>
    %121 = arith.subf %119, %120 : vector<16x16xf32>
    %122 = arith.mulf %121, %117 : vector<16x16xf32>
    %cst_37 = arith.constant 0.199777111 : f32
    %123 = vector.broadcast %cst_37 : f32 to vector<16x16xf32>
    %124 = arith.addf %122, %123 : vector<16x16xf32>
    %125 = arith.mulf %124, %117 : vector<16x16xf32>
    %cst_38 = arith.constant 0.333329499 : f32
    %126 = vector.broadcast %cst_38 : f32 to vector<16x16xf32>
    %127 = arith.subf %125, %126 : vector<16x16xf32>
    %128 = arith.addf %116, %111 : vector<16x16xf32>
    %129 = arith.mulf %111, %117 : vector<16x16xf32>
    %130 = arith.mulf %129, %127 : vector<16x16xf32>
    %131 = arith.addf %128, %130 : vector<16x16xf32>
    %132 = arith.mulf %92, %131 : vector<16x16xf32>
    %cst_39 = arith.constant 0.00999999977 : f32
    %133 = vector.broadcast %cst_39 : f32 to vector<16x16xf32>
    %134 = arith.mulf %34, %133 : vector<16x16xf32>
    %cst_40 = arith.constant 0.00999999977 : f32
    %135 = vector.broadcast %cst_40 : f32 to vector<16x16xf32>
    %136 = arith.mulf %38, %135 : vector<16x16xf32>
    %cst_41 = arith.constant 1.500000e+01 : f32
    %137 = vector.broadcast %cst_41 : f32 to vector<16x16xf32>
    %138 = arith.subf %137, %5 : vector<16x16xf32>
    %cst_42 = arith.constant 1.500000e+01 : f32
    %139 = vector.broadcast %cst_42 : f32 to vector<16x16xf32>
    %140 = arith.subf %139, %6 : vector<16x16xf32>
    %c0_43 = arith.constant 0 : index
    %c0_44 = arith.constant 0 : index
    %c0_45 = arith.constant 0 : index
    %c0_46 = arith.constant 0 : index
    %141 = vector.load %arg3[%c0_43, %c0_44, %c0_45, %c0_46] : memref<1x13x16x16xf32, #tpu.memory_space<vmem>>, vector<1x1x16x16xf32>
    %142 = vector.shape_cast %141 : vector<1x1x16x16xf32> to vector<16x16xf32>
    %143 = vector.shape_cast %18 : vector<16x16xf32> to vector<1x1x16x16xf32>
    tpu.vector_store %arg3[%c0_43, %c0_44, %c0_45, %c0_46], %143 {strides = array<i32>} : memref<1x13x16x16xf32, #tpu.memory_space<vmem>>, vector<1x1x16x16xf32>,
    %c0_47 = arith.constant 0 : index
    %c1_48 = arith.constant 1 : index
    %c0_49 = arith.constant 0 : index
    %c0_50 = arith.constant 0 : index
    %144 = vector.load %arg3[%c0_47, %c1_48, %c0_49, %c0_50] : memref<1x13x16x16xf32, #tpu.memory_space<vmem>>, vector<1x1x16x16xf32>
    %145 = vector.shape_cast %144 : vector<1x1x16x16xf32> to vector<16x16xf32>
    %146 = vector.shape_cast %22 : vector<16x16xf32> to vector<1x1x16x16xf32>
    tpu.vector_store %arg3[%c0_47, %c1_48, %c0_49, %c0_50], %146 {strides = array<i32>} : memref<1x13x16x16xf32, #tpu.memory_space<vmem>>, vector<1x1x16x16xf32>,
    %c0_51 = arith.constant 0 : index
    %c2_52 = arith.constant 2 : index
    %c0_53 = arith.constant 0 : index
    %c0_54 = arith.constant 0 : index
    %147 = vector.load %arg3[%c0_51, %c2_52, %c0_53, %c0_54] : memref<1x13x16x16xf32, #tpu.memory_space<vmem>>, vector<1x1x16x16xf32>
    %148 = vector.shape_cast %147 : vector<1x1x16x16xf32> to vector<16x16xf32>
    %149 = vector.shape_cast %30 : vector<16x16xf32> to vector<1x1x16x16xf32>
    tpu.vector_store %arg3[%c0_51, %c2_52, %c0_53, %c0_54], %149 {strides = array<i32>} : memref<1x13x16x16xf32, #tpu.memory_space<vmem>>, vector<1x1x16x16xf32>,
    %c0_55 = arith.constant 0 : index
    %c3_56 = arith.constant 3 : index
    %c0_57 = arith.constant 0 : index
    %c0_58 = arith.constant 0 : index
    %150 = vector.load %arg3[%c0_55, %c3_56, %c0_57, %c0_58] : memref<1x13x16x16xf32, #tpu.memory_space<vmem>>, vector<1x1x16x16xf32>
    %151 = vector.shape_cast %150 : vector<1x1x16x16xf32> to vector<16x16xf32>
    %152 = vector.shape_cast %85 : vector<16x16xf32> to vector<1x1x16x16xf32>
    tpu.vector_store %arg3[%c0_55, %c3_56, %c0_57, %c0_58], %152 {strides = array<i32>} : memref<1x13x16x16xf32, #tpu.memory_space<vmem>>, vector<1x1x16x16xf32>,
    %c0_59 = arith.constant 0 : index
    %c4 = arith.constant 4 : index
    %c0_60 = arith.constant 0 : index
    %c0_61 = arith.constant 0 : index
    %153 = vector.load %arg3[%c0_59, %c4, %c0_60, %c0_61] : memref<1x13x16x16xf32, #tpu.memory_space<vmem>>, vector<1x1x16x16xf32>
    %154 = vector.shape_cast %153 : vector<1x1x16x16xf32> to vector<16x16xf32>
    %155 = vector.shape_cast %132 : vector<16x16xf32> to vector<1x1x16x16xf32>
    tpu.vector_store %arg3[%c0_59, %c4, %c0_60, %c0_61], %155 {strides = array<i32>} : memref<1x13x16x16xf32, #tpu.memory_space<vmem>>, vector<1x1x16x16xf32>,
    %c0_62 = arith.constant 0 : index
    %c5 = arith.constant 5 : index
    %c0_63 = arith.constant 0 : index
    %c0_64 = arith.constant 0 : index
    %156 = vector.load %arg3[%c0_62, %c5, %c0_63, %c0_64] : memref<1x13x16x16xf32, #tpu.memory_space<vmem>>, vector<1x1x16x16xf32>
    %157 = vector.shape_cast %156 : vector<1x1x16x16xf32> to vector<16x16xf32>
    %158 = vector.shape_cast %134 : vector<16x16xf32> to vector<1x1x16x16xf32>
    tpu.vector_store %arg3[%c0_62, %c5, %c0_63, %c0_64], %158 {strides = array<i32>} : memref<1x13x16x16xf32, #tpu.memory_space<vmem>>, vector<1x1x16x16xf32>,
    %c0_65 = arith.constant 0 : index
    %c6 = arith.constant 6 : index
    %c0_66 = arith.constant 0 : index
    %c0_67 = arith.constant 0 : index
    %159 = vector.load %arg3[%c0_65, %c6, %c0_66, %c0_67] : memref<1x13x16x16xf32, #tpu.memory_space<vmem>>, vector<1x1x16x16xf32>
    %160 = vector.shape_cast %159 : vector<1x1x16x16xf32> to vector<16x16xf32>
    %161 = vector.shape_cast %136 : vector<16x16xf32> to vector<1x1x16x16xf32>
    tpu.vector_store %arg3[%c0_65, %c6, %c0_66, %c0_67], %161 {strides = array<i32>} : memref<1x13x16x16xf32, #tpu.memory_space<vmem>>, vector<1x1x16x16xf32>,
    %c0_68 = arith.constant 0 : index
    %c7 = arith.constant 7 : index
    %c0_69 = arith.constant 0 : index
    %c0_70 = arith.constant 0 : index
    %162 = vector.load %arg3[%c0_68, %c7, %c0_69, %c0_70] : memref<1x13x16x16xf32, #tpu.memory_space<vmem>>, vector<1x1x16x16xf32>
    %163 = vector.shape_cast %162 : vector<1x1x16x16xf32> to vector<16x16xf32>
    %164 = vector.shape_cast %5 : vector<16x16xf32> to vector<1x1x16x16xf32>
    tpu.vector_store %arg3[%c0_68, %c7, %c0_69, %c0_70], %164 {strides = array<i32>} : memref<1x13x16x16xf32, #tpu.memory_space<vmem>>, vector<1x1x16x16xf32>,
    %c0_71 = arith.constant 0 : index
    %c8 = arith.constant 8 : index
    %c0_72 = arith.constant 0 : index
    %c0_73 = arith.constant 0 : index
    %165 = vector.load %arg3[%c0_71, %c8, %c0_72, %c0_73] : memref<1x13x16x16xf32, #tpu.memory_space<vmem>>, vector<1x1x16x16xf32>
    %166 = vector.shape_cast %165 : vector<1x1x16x16xf32> to vector<16x16xf32>
    %167 = vector.shape_cast %6 : vector<16x16xf32> to vector<1x1x16x16xf32>
    tpu.vector_store %arg3[%c0_71, %c8, %c0_72, %c0_73], %167 {strides = array<i32>} : memref<1x13x16x16xf32, #tpu.memory_space<vmem>>, vector<1x1x16x16xf32>,
    %c0_74 = arith.constant 0 : index
    %c9 = arith.constant 9 : index
    %c0_75 = arith.constant 0 : index
    %c0_76 = arith.constant 0 : index
    %168 = vector.load %arg3[%c0_74, %c9, %c0_75, %c0_76] : memref<1x13x16x16xf32, #tpu.memory_space<vmem>>, vector<1x1x16x16xf32>
    %169 = vector.shape_cast %168 : vector<1x1x16x16xf32> to vector<16x16xf32>
    %170 = vector.shape_cast %5 : vector<16x16xf32> to vector<1x1x16x16xf32>
    tpu.vector_store %arg3[%c0_74, %c9, %c0_75, %c0_76], %170 {strides = array<i32>} : memref<1x13x16x16xf32, #tpu.memory_space<vmem>>, vector<1x1x16x16xf32>,
    %c0_77 = arith.constant 0 : index
    %c10 = arith.constant 10 : index
    %c0_78 = arith.constant 0 : index
    %c0_79 = arith.constant 0 : index
    %171 = vector.load %arg3[%c0_77, %c10, %c0_78, %c0_79] : memref<1x13x16x16xf32, #tpu.memory_space<vmem>>, vector<1x1x16x16xf32>
    %172 = vector.shape_cast %171 : vector<1x1x16x16xf32> to vector<16x16xf32>
    %173 = vector.shape_cast %138 : vector<16x16xf32> to vector<1x1x16x16xf32>
    tpu.vector_store %arg3[%c0_77, %c10, %c0_78, %c0_79], %173 {strides = array<i32>} : memref<1x13x16x16xf32, #tpu.memory_space<vmem>>, vector<1x1x16x16xf32>,
    %c0_80 = arith.constant 0 : index
    %c11 = arith.constant 11 : index
    %c0_81 = arith.constant 0 : index
    %c0_82 = arith.constant 0 : index
    %174 = vector.load %arg3[%c0_80, %c11, %c0_81, %c0_82] : memref<1x13x16x16xf32, #tpu.memory_space<vmem>>, vector<1x1x16x16xf32>
    %175 = vector.shape_cast %174 : vector<1x1x16x16xf32> to vector<16x16xf32>
    %176 = vector.shape_cast %6 : vector<16x16xf32> to vector<1x1x16x16xf32>
    tpu.vector_store %arg3[%c0_80, %c11, %c0_81, %c0_82], %176 {strides = array<i32>} : memref<1x13x16x16xf32, #tpu.memory_space<vmem>>, vector<1x1x16x16xf32>,
    %c0_83 = arith.constant 0 : index
    %c12 = arith.constant 12 : index
    %c0_84 = arith.constant 0 : index
    %c0_85 = arith.constant 0 : index
    %177 = vector.load %arg3[%c0_83, %c12, %c0_84, %c0_85] : memref<1x13x16x16xf32, #tpu.memory_space<vmem>>, vector<1x1x16x16xf32>
    %178 = vector.shape_cast %177 : vector<1x1x16x16xf32> to vector<16x16xf32>
    %179 = vector.shape_cast %140 : vector<16x16xf32> to vector<1x1x16x16xf32>
    tpu.vector_store %arg3[%c0_83, %c12, %c0_84, %c0_85], %179 {strides = array<i32>} : memref<1x13x16x16xf32, #tpu.memory_space<vmem>>, vector<1x1x16x16xf32>,
    return
  }
  func.func @transform_0(%arg0: i32, %arg1: i32) -> (i32, i32) {
    %c0_i32 = arith.constant 0 : i32
    %c0_i32_0 = arith.constant 0 : i32
    %c0_i32_1 = arith.constant 0 : i32
    return %c0_i32, %c0_i32_0 : i32, i32
  }
  func.func @transform_1(%arg0: i32, %arg1: i32) -> (i32, i32, i32, i32) {
    %c0_i32 = arith.constant 0 : i32
    %c0_i32_0 = arith.constant 0 : i32
    %c0_i32_1 = arith.constant 0 : i32
    return %arg0, %c0_i32, %arg1, %c0_i32_0 : i32, i32, i32, i32
  }
}

</mosaic_0001>

<bundles_post_ra>
// kernel: tpu_custom_call.1
= control target key start
LH: loop header
LB: loop body
LE: loop exit
PB: predicated region body
PF: predicated region fallthrough
CT: control target
= control target key end

     0   :  { %6 = vsyncpa [#allocation4], 0  ;;  %s932_s0 = inlined_call_operand.hbm [shape: f32[2,4], index: 0, kind: input, shape index: {}]   ;;  %s933_s1 = inlined_call_operand.hbm [shape: f32[2,13,16,16], index: 1, kind: output, shape index: {}]  }
   0x1   :  { %7 = vsyncpa [#allocation3], 0 }
   0x2   :  { %9 = vsyncpa [#allocation3 + $0x1], 0  ;;  %s648_s6 = smov 0   ;;  %s650_s7 = smov 0  }
   0x3   :  { %s652_s8 = smov 0   ;;  %s654_s9 = smov 0  }
   0x4   :  { %s656_s10 = smov 0   ;;  %s658_s11 = smov 0  }
   0x5 LB: > { %s404_s12 = sadd.s32 4294967295, %s630_s11   ;;  %s405_s13 = sadd.s32 4294967294, %s630_s11   ;;  %s630_s11 = sphi %s658_s11, %s15_s11   ;;  %s626_s10 = sphi %s656_s10, %s942_s10   ;;  %s622_s9 = sphi %s654_s9, %s941_s9   ;;  %s618_s8 = sphi %s652_s8, %s940_s8   ;;  %s614_s7 = sphi %s650_s7, %s939_s7   ;;  %s610_s6 = sphi %s648_s6, %s938_s6  }
   0x6   : > { %s27_s14 = sadd.s32 1, %s626_s10  ;;  %s57_s15 = sadd.s32 1, %s618_s8 }
   0x7   : > { %p29_p0 = scmp.ge.s32.totalorder %s27_s14, 2  ;;  %p67_p1 = scmp.ne.s32.totalorder %s618_s8, %s614_s7 }
   0x8   : > { %p68_p2 = scmp.eq.s32.totalorder %s404_s12, 1  ;;  %p73_p3 = scmp.ne.s32.totalorder %s614_s7, %s610_s6 }
   0x9   : > { %s944_s14 = smov (%p29_p0, %s27_s14), 0  ;;  %p74_p5 = scmp.eq.s32.totalorder %s405_s13, 1 }
   0xa   : > { %p688_p4 = por %p68_p2, %p67_p1  ;;  %s52_s17 = ssub.s32 %s626_s10, %s944_s14 }
   0xb   : > { %p406_p6 = scmp.ge.s32.totalorder %s630_s11, 1  ;;  %p55_p7 = scmp.eq.s32.totalorder %s52_s17, 0 }
   0xc   : > { %p695_p8 = por %p74_p5, %p73_p3  ;;  %p81_p9 = scmp.lt.s32.totalorder %s630_s11, 3 }
   0xd   : > { %s701_s19 = scalar_select %p55_p7, %s618_s8, %s57_s15  }
   0xe   : > { %p703_p10 = pnand %p406_p6, %p81_p9  ;;  %p707_p11 = scmp.eq.s32.totalorder %s404_s12, 0 }
   0xf   : > { %s535_s24 = scalar_lea.hbm %s932_s0, 32 }
  0x10   : > { %p461_p12 = pneg %p703_p10  ;;  %p536_p0 = scmp.ne.s32.totalorder %s932_s0, %s535_s24 }
  0x11   : > { %p542_p5 = scmp.lt.u32.totalorder %s535_s24, %s932_s0 }
  0x12   : > { %p462_p13 = pnand %p707_p11, %p461_p12 }
  0x14   : > { %p537_p1 = pneg %p462_p13 }
  0x16   : > { %p538_p2 = pnand %p537_p1, %p536_p0 }
  0x18   : > { %p539_p3 = pneg %p538_p2 }
  0x1a   : > { %p544_p6 = pnand %p542_p5, %p539_p3 }
  0x1c   : > { %547 = shalt.err (!%p544_p6)
}
  0x1d   : > { %s632_s29 = smov [#allocation2]   ;;  %105 = sbr.rel (%p703_p10) target bundleno = 118 (0x76), region = 24 }
  0x1e   : > { %464 = dma.hbm_to_smem (!%p462_p13), %s932_s0, 32, %s632_s29, [#allocation4]  }
  0x24   : > { %601 = dma.done.wait (%p707_p11), [#allocation4], 32  }
  0x25   : > { %603 = vsyncadd (%p707_p11), [#allocation4], 4294967264 }
  0x26   : > { %111 = sfence }
  0x27   : > { %s118_s3 = sand.u32 1, %s614_s7   ;;  %v122_v0 = vlaneseq  ;;  %s735_s4 = sshll.u32 %s622_s9, 7  ;;  %vm276_vm0 = vcmask 130048  }
  0x28   : > { %s453_s5 = smul.u32 208, %s118_s3  ;;  %s740_s12 = sld [smem:[#allocation2 + %s735_s4]] }
  0x29   : > { %v123_v1 = vand.u32 127, %v122_v0  ;;  %v125_v2 = vshrl.u32 %v122_v0, 7  ;;  %s138_s13 = sadd.s32 2, %s735_s4  ;;  %s136_s17 = sadd.s32 1, %s735_s4 }
  0x2a   : > { %s743_s15 = sld [smem:[#allocation2 + %s138_s13]]  ;;  %s140_s21 = sadd.s32 3, %s735_s4 }
  0x2b   : > { %v131_v3 = vcvt.s32.f32 %v123_v1  ;;  %v132_v4 = vcvt.s32.f32 %v125_v2  ;;  %v126_v5 = vadd.s32 8, %v125_v2  ;;  %s746_s20 = sld [smem:[#allocation2 + %s136_s17]]  ;;  %s749_s22 = scalar_lea.vmem [#allocation5], %s453_s5 }
  0x2c   : > { %s768_s23 = sld [smem:[#allocation2 + %s140_s21]]  ;;  %s454_s24 = smul.u32 3328, %s622_s9 }
  0x2d   : > { %v142_v6 = vmul.f32 0.13333334, %v131_v3  ;;  %438 = vst.msk [vmem:[%s749_s22 + $0x70] sm:$0xff] %vm276_vm0, %v131_v3  ;;  %439 = vst.msk [vmem:[%s749_s22 + $0x78] sm:$0xff] %vm276_vm0, %v131_v3  ;;  %v144_v7 = vmul.f32 0.13333334, %v132_v4  ;;  %v133_v8 = vcvt.s32.f32 %v126_v5 }
  0x2e   : > { %442 = vst.msk [vmem:[%s749_s22 + $0x90] sm:$0xff] %vm276_vm0, %v131_v3  ;;  %443 = vst.msk [vmem:[%s749_s22 + $0x98] sm:$0xff] %vm276_vm0, %v131_v3  ;;  %v273_v9 = vsub.f32 15.0, %v131_v3  ;;  %v274_v10 = vsub.f32 15.0, %v132_v4  ;;  %v170_v14 = vstv %s740_s12  ;;  %s331_s25 = sshll.u32 %s749_s22, 4  ;;  %s876_s28 = scalar_lea.hbm %s933_s1, %s454_s24  ;;  %s878_s25 = int_to_ptr.vmem [resolvable:$true] %s331_s25 }
  0x2f   : > { %440 = vst.msk [vmem:[%s749_s22 + $0x80] sm:$0xff] %vm276_vm0, %v132_v4  ;;  %446 = vst.msk [vmem:[%s749_s22 + $0xb0] sm:$0xff] %vm276_vm0, %v132_v4  ;;  %v411_v11 = vadd.f32 -1.0, %v142_v6  ;;  %v412_v12 = vadd.f32 -1.0, %v144_v7  ;;  %v145_v13 = vmul.f32 0.13333334, %v133_v8  ;;  %v171_v15 = vsub.f32 %v131_v3, %v170_v14 }
  0x30   : > { %441 = vst.msk [vmem:[%s749_s22 + $0x88] sm:$0xff] %vm276_vm0, %v133_v8  ;;  %447 = vst.msk [vmem:[%s749_s22 + $0xb8] sm:$0xff] %vm276_vm0, %v133_v8  ;;  %v275_v16 = vsub.f32 15.0, %v133_v8  ;;  %v178_v20 = vstv %s743_s15  ;;  %s886_s9 = scalar_lea.sflag [#allocation3], %s118_s3  ;;  %s548_s29 = scalar_lea.vmem %s878_s25, 3328 }
  0x31   : > { %444 = vst.msk [vmem:[%s749_s22 + $0xa0] sm:$0xff] %vm276_vm0, %v273_v9  ;;  %445 = vst.msk [vmem:[%s749_s22 + $0xa8] sm:$0xff] %vm276_vm0, %v273_v9  ;;  %v414_v17 = vadd.f32 -0.5, %v411_v11  ;;  %v415_v18 = vadd.f32 -0.5, %v412_v12  ;;  %v413_v19 = vadd.f32 -1.0, %v145_v13  ;;  %v172_v21 = vadd.f32 0.5, %v171_v15  ;;  %p549_p7 = scmp.ne.s32.totalorder %s878_s25, %s548_s29 }
  0x32   : > { %448 = vst.msk [vmem:[%s749_s22 + $0xc0] sm:$0xff] %vm276_vm0, %v274_v10  ;;  %277 = vst.msk [vmem:[%s749_s22] sm:$0xff] %vm276_vm0, %v411_v11  ;;  %v173_v22 = vstv %s746_s20  ;;  %v209_v35 = vstv %s768_s23  ;;  %s635_s30 = smov [#allocation5]  }
  0x33   : > { %278 = vst.msk [vmem:[%s749_s22 + $0x8] sm:$0xff] %vm276_vm0, %v411_v11  ;;  %426 = vst.msk [vmem:[%s749_s22 + $0x10] sm:$0xff] %vm276_vm0, %v412_v12  ;;  %v149_v23 = vmul.f32 %v414_v17, %v414_v17  ;;  %v152_v24 = vmul.f32 %v415_v18, %v415_v18  ;;  %v416_v25 = vadd.f32 -0.5, %v413_v19  ;;  %v174_v26 = vsub.f32 %v132_v4, %v173_v22  ;;  %p550_p9 = pnand %p549_p7, %p688_p4  ;;  %s552_s2 = sshll.u32 %s635_s30, 4  ;;  %s553_s2 = int_to_ptr.vmem [resolvable:$false] %s552_s2 }
  0x34   : > { %449 = vst.msk [vmem:[%s749_s22 + $0xc8] sm:$0xff] %vm276_vm0, %v275_v16  ;;  %427 = vst.msk [vmem:[%s749_s22 + $0x18] sm:$0xff] %vm276_vm0, %v413_v19  ;;  %v788_v27 = vmul.f32 %v178_v20, %v172_v21  ;;  %v175_v28 = vsub.f32 %v133_v8, %v173_v22  ;;  %v270_v29 = vmul.f32 0.01, %v172_v21  ;;  %s554_s4 = scalar_lea.vmem %s553_s2, 6656  ;;  %p555_p11 = scmp.lt.s32.totalorder %s878_s25, %s553_s2 }
  0x35   : > { %v154_v30 = vadd.f32 %v152_v24, %v149_v23  ;;  %v153_v31 = vmul.f32 %v416_v25, %v416_v25  ;;  %v176_v33 = vadd.f32 0.5, %v174_v26  ;;  %v633_v24 = vmov 0.0   ;;  %p551_p10 = pneg %p550_p9  ;;  %p556_p12 = scmp.lt.s32.totalorder %s554_s4, %s548_s29 }
  0x36   : > { %v791_v32 = vand.u32 2147483647, %v788_v27  ;;  %434 = vst.msk [vmem:[%s749_s22 + $0x50] sm:$0xff] %vm276_vm0, %v270_v29  ;;  %435 = vst.msk [vmem:[%s749_s22 + $0x58] sm:$0xff] %vm276_vm0, %v270_v29  ;;  %v177_v36 = vadd.f32 0.5, %v175_v28  ;;  %vm180_vm11 = vcmp.lt.f32.partialorder %v788_v27, 0.0 }
  0x37   : > { %v155_v34 = vadd.f32 %v153_v31, %v149_v23  ;;  %525 = vrsqrt.f32 %v154_v30  ;;  %v800_v38 = vmul.f32 %v209_v35, %v176_v33  ;;  %v271_v40 = vmul.f32 0.01, %v176_v33  ;;  %p557_p13 = por %p556_p12, %p555_p11 }
  0x38   : > { %vm183_vm1 = vcmp.gt.f32.partialorder %v791_v32, 2.4142137  ;;  %v185_v37 = vadd.f32 1.0, %v791_v32  ;;  %v802_v39 = vmul.f32 %v209_v35, %v177_v36  ;;  %v272_v41 = vmul.f32 0.01, %v177_v36 }
  0x39   : > { %527 = vrsqrt.f32 %v155_v34  ;;  %v808_v43 = vand.u32 2147483647, %v800_v38  ;;  %436 = vst.msk [vmem:[%s749_s22 + $0x60] sm:$0xff] %vm276_vm0, %v271_v40  ;;  %vm158_vm4 = vcmp.eq.f32.partialorder %v154_v30, inf  ;;  %v161_v49 = vand.u32 2147483648, %v154_v30  ;;  %p558_p0 = pnand %p557_p13, %p551_p10 }
  0x3a   : > { %v186_v42 = vsel %vm183_vm1, %v791_v32, %v185_v37  ;;  %v811_v44 = vand.u32 2147483647, %v802_v39  ;;  %437 = vst.msk [vmem:[%s749_s22 + $0x68] sm:$0xff] %vm276_vm0, %v272_v41  ;;  %vm160_vm5 = vcmp.eq.f32.partialorder %v154_v30, 0.0  ;;  %vm165_vm6 = vcmp.eq.f32.partialorder %v155_v34, inf }
  0x3b   : > { %529 = vrcp.f32 %v186_v42  ;;  %vm218_vm2 = vcmp.gt.f32.partialorder %v808_v43, 2.4142137  ;;  %v222_v45 = vadd.f32 1.0, %v808_v43  ;;  %v168_v53 = vand.u32 2147483648, %v155_v34 }
  0x3c   : > { %vm219_vm3 = vcmp.gt.f32.partialorder %v811_v44, 2.4142137  ;;  %v223_v46 = vadd.f32 1.0, %v811_v44  ;;  %vm167_vm7 = vcmp.eq.f32.partialorder %v155_v34, 0.0  ;;  %v417_v60 = vadd.f32 -1.0, %v791_v32 }
  0x3d   : > { %v224_v47 = vsel %vm218_vm2, %v808_v43, %v222_v45  ;;  %v420_v1 = vadd.f32 -1.0, %v808_v43  ;;  %v421_v5 = vadd.f32 -1.0, %v811_v44  ;;  %vm184_vm8 = vcmp.gt.f32.partialorder %v791_v32, 0.41421357 }
  0x3e   : > { %531 = vrcp.f32 %v224_v47  ;;  %v225_v50 = vsel %vm219_vm3, %v811_v44, %v223_v46  ;;  %v188_v0 = vsel %vm183_vm1, -1.0, %v417_v60  ;;  %vm220_vm9 = vcmp.gt.f32.partialorder %v808_v43, 0.41421357 }
  0x3f   : > { %533 = vrcp.f32 %v225_v50  ;;  %v228_v9 = vsel %vm218_vm2, -1.0, %v420_v1  ;;  %v229_v13 = vsel %vm219_vm3, -1.0, %v421_v5  ;;  %vm221_vm10 = vcmp.gt.f32.partialorder %v811_v44, 0.41421357 }
  0x40   : > { %v195_v25 = vsel %vm184_vm8, 0.7853982, %v633_v24  ;;  %v242_v37 = vsel %vm220_vm9, 0.7853982, %v633_v24  ;;  %v243_v41 = vsel %vm221_vm10, 0.7853982, %v633_v24 }
  0x41   : > { %v526_v48 = vpop.eup %525  ;;  %v196_v33 = vsel %vm183_vm1, 1.5707964, %v195_v25  ;;  %vm212_vm12 = vcmp.lt.f32.partialorder %v800_v38, 0.0  ;;  %vm213_vm13 = vcmp.lt.f32.partialorder %v802_v39, 0.0 }
  0x42   : > { %v157_v51 = vmul.f32 %v526_v48, %v154_v30 }
  0x43   : > { %v528_v52 = vpop.eup %527 }
  0x44   : > { %v159_v54 = vsel %vm158_vm4, %v154_v30, %v157_v51  ;;  %v164_v55 = vmul.f32 %v528_v52, %v155_v34  ;;  %v245_v52 = vsel %vm219_vm3, 1.5707964, %v243_v41 }
  0x45   : > { %v162_v56 = vsel %vm160_vm5, %v161_v49, %v159_v54  ;;  %v530_v58 = vpop.eup %529 }
  0x46   : > { %428 = vst.msk [vmem:[%s749_s22 + $0x20] sm:$0xff] %vm276_vm0, %v162_v56  ;;  %v166_v57 = vsel %vm165_vm6, %v155_v34, %v164_v55  ;;  %v190_v61 = vmul.f32 %v530_v58, %v186_v42 }
  0x47   : > { %v169_v59 = vsel %vm167_vm7, %v168_v53, %v166_v57  ;;  %v634_v53 = vmov 1.0  }
  0x48   : > { %429 = vst.msk [vmem:[%s749_s22 + $0x28] sm:$0xff] %vm276_vm0, %v169_v59  ;;  %v191_v62 = vsub.f32 2.0, %v190_v61  ;;  %v532_v63 = vpop.eup %531  ;;  %v181_v54 = vsel %vm180_vm11, -1.0, %v634_v53  ;;  %v214_v61 = vsel %vm212_vm12, -1.0, %v634_v53 }
  0x49   : > { %v534_v2 = vpop.eup %533  ;;  %v232_v4 = vmul.f32 %v532_v63, %v224_v47 }
  0x4a   : > { %v192_v3 = vmul.f32 %v530_v58, %v191_v62  ;;  %v233_v6 = vmul.f32 %v534_v2, %v225_v50 }
  0x4b   : > { %v234_v8 = vsub.f32 2.0, %v232_v4 }
  0x4c   : > { %v193_v7 = vmul.f32 %v192_v3, %v188_v0  ;;  %v235_v10 = vsub.f32 2.0, %v233_v6 }
  0x4d   : > { %v236_v12 = vmul.f32 %v532_v63, %v234_v8  ;;  %v215_v63 = vsel %vm213_vm13, -1.0, %v634_v53 }
  0x4e   : > { %v194_v11 = vsel %vm184_vm8, %v193_v7, %v791_v32  ;;  %v237_v15 = vmul.f32 %v534_v2, %v235_v10  ;;  %v244_v32 = vsel %vm218_vm2, 1.5707964, %v242_v37 }
  0x4f   : > { %v197_v14 = vmul.f32 %v194_v11, %v194_v11  ;;  %v238_v16 = vmul.f32 %v236_v12, %v228_v9  ;;  %v204_v46 = vadd.f32 %v196_v33, %v194_v11 }
  0x50   : > { %v239_v18 = vmul.f32 %v237_v15, %v229_v13 }
  0x51   : > { %v198_v17 = vmul.f32 0.080537446, %v197_v14  ;;  %v240_v19 = vsel %vm220_vm9, %v238_v16, %v808_v43  ;;  %v205_v36 = vmul.f32 %v197_v14, %v194_v11 }
  0x52   : > { %v246_v21 = vmul.f32 %v240_v19, %v240_v19  ;;  %v241_v22 = vsel %vm221_vm10, %v239_v18, %v811_v44  ;;  %v260_v57 = vadd.f32 %v244_v32, %v240_v19 }
  0x53   : > { %v418_v20 = vadd.f32 -0.13877685, %v198_v17  ;;  %v247_v23 = vmul.f32 %v241_v22, %v241_v22  ;;  %v261_v59 = vadd.f32 %v245_v52, %v241_v22 }
  0x54   : > { %v248_v28 = vmul.f32 0.080537446, %v246_v21  ;;  %v262_v51 = vmul.f32 %v246_v21, %v240_v19 }
  0x55   : > { %v200_v26 = vmul.f32 %v418_v20, %v197_v14  ;;  %v249_v29 = vmul.f32 0.080537446, %v247_v23  ;;  %v263_v27 = vmul.f32 %v247_v23, %v241_v22 }
  0x56   : > { %v422_v31 = vadd.f32 -0.13877685, %v248_v28 }
  0x57   : > { %v201_v30 = vadd.f32 0.19977711, %v200_v26  ;;  %v423_v34 = vadd.f32 -0.13877685, %v249_v29 }
  0x58   : > { %v252_v40 = vmul.f32 %v422_v31, %v246_v21 }
  0x59   : > { %v202_v35 = vmul.f32 %v201_v30, %v197_v14  ;;  %v253_v42 = vmul.f32 %v423_v34, %v247_v23 }
  0x5a   : > { %v254_v47 = vadd.f32 0.19977711, %v252_v40 }
  0x5b   : > { %v419_v45 = vadd.f32 -0.3333295, %v202_v35  ;;  %v255_v48 = vadd.f32 0.19977711, %v253_v42 }
  0x5c   : > { %v256_v50 = vmul.f32 %v254_v47, %v246_v21 }
  0x5d   : > { %v206_v49 = vmul.f32 %v419_v45, %v205_v36  ;;  %v257_v55 = vmul.f32 %v255_v48, %v247_v23 }
  0x5e   : > { %v424_v43 = vadd.f32 -0.3333295, %v256_v50 }
  0x5f   : > { %v207_v56 = vadd.f32 %v206_v49, %v204_v46  ;;  %v425_v58 = vadd.f32 -0.3333295, %v257_v55 }
  0x60   : > { %v264_v44 = vmul.f32 %v424_v43, %v262_v51 }
  0x61   : > { %v208_v60 = vmul.f32 %v207_v56, %v181_v54  ;;  %v265_v62 = vmul.f32 %v425_v58, %v263_v27 }
  0x62   : > { %v266_v38 = vadd.f32 %v264_v44, %v260_v57 }
  0x63   : > { %430 = vst.msk [vmem:[%s749_s22 + $0x30] sm:$0xff] %vm276_vm0, %v208_v60  ;;  %431 = vst.msk [vmem:[%s749_s22 + $0x38] sm:$0xff] %vm276_vm0, %v208_v60  ;;  %v267_v0 = vadd.f32 %v265_v62, %v261_v59 }
  0x64   : > { %v268_v39 = vmul.f32 %v266_v38, %v214_v61 }
  0x65   : > { %v269_v1 = vmul.f32 %v267_v0, %v215_v63 }
  0x66   : > { %432 = vst.msk [vmem:[%s749_s22 + $0x40] sm:$0xff] %vm276_vm0, %v268_v39 }
  0x67   : > { %433 = vst.msk [vmem:[%s749_s22 + $0x48] sm:$0xff] %vm276_vm0, %v269_v1 }
  0x68   : > { %561 = shalt.err (!%p558_p0)
}
  0x69   : > { %s562_s3 = scalar_lea.hbm %s876_s28, 3328  ;;  %s566_s13 = scalar_lea.hbm %s933_s1, 6656 }
  0x6a   : > { %p563_p1 = scmp.ne.s32.totalorder %s876_s28, %s562_s3  ;;  %p567_p5 = scmp.lt.u32.totalorder %s876_s28, %s933_s1 }
  0x6b   : > { %p568_p6 = scmp.lt.u32.totalorder %s566_s13, %s562_s3  ;;  %p570_p9 = scmp.lt.u32.totalorder %s562_s3, %s876_s28 }
  0x6c   : > { %p564_p2 = pnand %p563_p1, %p688_p4 }
  0x6d   : > { %p569_p7 = por %p568_p6, %p567_p5 }
  0x6e   : > { %p565_p3 = pneg %p564_p2 }
  0x6f   : > { %p571_p10 = por %p570_p9, %p569_p7 }
  0x71   : > { %p572_p11 = pnand %p571_p10, %p565_p3 }
  0x73   : > { %575 = shalt.err (!%p572_p11)
}
  0x74   : > { %s636_s20 = smov 128   ;;  %s637_s21 = smov 8  }
  0x75   : > { %459 = dma.vmem_to_hbm [thread:$0]  (%p688_p4), %s878_s25, 3328, %s876_s28, %s886_s9, %s636_s20, %s636_s20, %s637_s21  }
  0x76 PF: > { %p471_p12 = scmp.ge.s32.totalorder %s630_s11, 2  ;;  %s346_s22 = sand.u32 1, %s610_s6  }
  0x77   : > { %s347_s23 = scalar_lea.sflag [#allocation3], %s346_s22 }
  0x78   : > { %p466_p13 = pnand %p471_p12, %p695_p8 }
  0x7a   : > { %605 = dma.done.wait (!%p466_p13), %s347_s23, 3328  }
  0x7b   : > { %607 = vsyncadd (!%p466_p13), %s347_s23, 4294963968  ;;  %s15_s11 = sadd.s32 1, %s630_s11   ;;  %s938_s6 = smov %s614_s7 }
  0x7c   : > { %p12_p0 = scmp.ge.s32.totalorder %s15_s11, 4   ;;  %s939_s7 = smov %s618_s8 }
  0x7d   : > { %s940_s8 = smov %s701_s19  ;;  %s941_s9 = smov %s626_s10 }
  0x7e   : > { %s942_s10 = smov %s944_s14  ;;  %14 = sbr.rel (!%p12_p0) target bundleno = 5 (0x5), region = 73 }
  0x85   :  { %352 = vsyncpa [#allocation3], 1 }
  0x86   :  { %354 = vsyncpa [#allocation3 + $0x1], 1 }
  0x87   :  { %355 = vsyncpa [#allocation4], 1 }
  0x88   :  { %357 = vsyncpa [#allocation4 + $0x1], 1 }

</bundles_post_ra>
